<compile_context>
chip_gen: v7x
topology: tpu7x:2x2x1
jax: 0.10.0
libtpu: 0.0.40
codegen_flags: <defaults>
</compile_context>

<pallas_src>
import functools

import jax
import jax.numpy as jnp
from jax.experimental import pallas as pl
from jax.experimental.pallas import tpu as pltpu

LANE = 128
SUBLANE = 8


def _round_up(n, m):
    return ((n + m - 1) // m) * m


# ----------------------------------------------------------------------------
# One-time parameter packing (hoisted out of the hot path).
# ----------------------------------------------------------------------------
def prepare_rnncell_params(w_ih, w_hh, b_ih, b_hh):
    """w_ih: (hid, dim), w_hh: (hid, hid), b_ih/b_hh: (hid,)

    Returns a dict of padded, pre-transposed f32 parameters:
      w_cat : (K_pad, H_pad)  == [W_ih^T ; W_hh^T]  (fused single-step matmul)
      w_ih_t: (D_pad, H_pad)  == W_ih^T             (sequence input projection)
      w_hh_t: (H_pad, H_pad)  == W_hh^T             (recurrent matvec)
      bias  : (1, H_pad)      == b_ih + b_hh
    Zero padding keeps all results exact.
    """
    hid, dim = w_ih.shape
    k = dim + hid
    d_pad = _round_up(dim, LANE)
    h_pad = _round_up(hid, LANE)
    k_pad = _round_up(k, LANE)

    w_ih_t = jnp.pad(w_ih.T.astype(jnp.float32),
                     ((0, d_pad - dim), (0, h_pad - hid)))
    w_hh_t = jnp.pad(w_hh.T.astype(jnp.float32),
                     ((0, h_pad - hid), (0, h_pad - hid)))

    w_cat = jnp.concatenate(
        [w_ih.T.astype(jnp.float32), w_hh.T.astype(jnp.float32)], axis=0)
    w_cat = jnp.pad(w_cat, ((0, k_pad - k), (0, h_pad - hid)))

    bias = jnp.pad((b_ih + b_hh).astype(jnp.float32).reshape(1, hid),
                   ((0, 0), (0, h_pad - hid)))

    return {"w_cat": w_cat, "w_ih_t": w_ih_t, "w_hh_t": w_hh_t, "bias": bias}


# ----------------------------------------------------------------------------
# Single-step kernel (matches the PyTorch module's forward exactly).
# ----------------------------------------------------------------------------
def _cell_kernel(xh_ref, w_ref, b_ref, out_ref):
    # One fused MXU matvec (f32 accumulate), bias on the VPU, tanh on the EUP.
    pre = jnp.dot(xh_ref[...], w_ref[...], preferred_element_type=jnp.float32)
    out_ref[...] = jnp.tanh(pre + b_ref[...])


@functools.partial(jax.jit, static_argnames=("dim", "hid"))
def rnn_cell_forward(x, h, w_cat, bias, *, dim, hid):
    """x: (dim,), h: (hid,) -> h' of shape (hid,)."""
    k_pad, h_pad = w_cat.shape
    k = dim + hid

    # Single concatenate + pad (lane-dense row; zero tail matches zero W rows).
    xh_row = jnp.pad(
        jnp.concatenate([x.astype(jnp.float32), h.astype(jnp.float32)]),
        (0, k_pad - k),
    ).reshape(1, k_pad)

    full = lambda shape: pl.BlockSpec(shape, lambda: (0,) * len(shape))
    out = pl.pallas_call(
        _cell_kernel,
        out_shape=jax.ShapeDtypeStruct((1, h_pad), jnp.float32),
        grid=(),
        in_specs=[
            full((1, k_pad)),       # packed [x, h] row
            full((k_pad, h_pad)),   # packed [W_ih^T ; W_hh^T]
            full((1, h_pad)),       # folded bias
        ],
        out_specs=full((1, h_pad)),
    )(xh_row, w_cat, bias)

    return out[0, :hid]


# ----------------------------------------------------------------------------
# Sequence-fused kernel: one pallas_call over T steps.
#   * W_hh^T and h0 use constant index_maps -> stay VMEM-resident.
#   * Hidden state is carried in a VMEM scratch across grid steps.
#   * Per-step input projections (+ folded bias) are precomputed outside.
# ----------------------------------------------------------------------------
def _seq_kernel(xproj_ref, whh_ref, h0_ref, out_ref, h_scr):
    @pl.when(pl.program_id(0) == 0)
    def _():
        h_scr[...] = h0_ref[...]   # explicit init: no stale-VMEM reads

    h_new = jnp.tanh(
        xproj_ref[0]
        + jnp.dot(h_scr[...], whh_ref[...], preferred_element_type=jnp.float32)
    )
    h_scr[...] = h_new
    out_ref[0] = h_new


@functools.partial(jax.jit, static_argnames=("dim", "hid"))
def rnn_sequence_forward(xs, h0, w_ih_t, w_hh_t, bias, *, dim, hid):
    """Step the cell over a sequence. xs: (T, dim), h0: (hid,) -> (T, hid)."""
    t_steps = xs.shape[0]
    d_pad, h_pad = w_ih_t.shape
    m_pad = SUBLANE  # batch-1 row padded to a full sublane group

    # Hoisted input projection: one batched lane/sublane-dense GEMM instead of
    # T tiny matvecs; bias folded in so the serial kernel is only the recurrence.
    xs_p = jnp.pad(xs.astype(jnp.float32), ((0, 0), (0, d_pad - dim)))
    xproj = xs_p @ w_ih_t + bias                                   # (T, H_pad)
    xproj = jnp.zeros((t_steps, m_pad, h_pad), jnp.float32).at[:, 0, :].set(xproj)

    h0_p = jnp.zeros((m_pad, h_pad), jnp.float32).at[0, :hid].set(
        h0.astype(jnp.float32))

    out = pl.pallas_call(
        _seq_kernel,
        out_shape=jax.ShapeDtypeStruct((t_steps, m_pad, h_pad), jnp.float32),
        grid=(t_steps,),
        in_specs=[
            pl.BlockSpec((1, m_pad, h_pad), lambda t: (t, 0, 0)),  # pre[t]
            pl.BlockSpec((h_pad, h_pad), lambda t: (0, 0)),        # resident W_hh^T
            pl.BlockSpec((m_pad, h_pad), lambda t: (0, 0)),        # resident h0
        ],
        out_specs=pl.BlockSpec((1, m_pad, h_pad), lambda t: (t, 0, 0)),
        scratch_shapes=[pltpu.VMEM((m_pad, h_pad), jnp.float32)],  # carried h
        compiler_params=pltpu.CompilerParams(
            dimension_semantics=("arbitrary",)),                   # serial recurrence
    )(xproj, w_hh_t, h0_p)

    return out[:, 0, :hid]


# ----------------------------------------------------------------------------
# Pure-JAX references (torch.nn.RNNCell, tanh nonlinearity).
# ----------------------------------------------------------------------------
def reference_forward(x, h, w_ih, w_hh, b_ih, b_hh):
    return jnp.tanh(x @ w_ih.T + b_ih + h @ w_hh.T + b_hh)


def reference_sequence(xs, h0, w_ih, w_hh, b_ih, b_hh):
    def step(h, x):
        h_new = jnp.tanh(x @ w_ih.T + b_ih + h @ w_hh.T + b_hh)
        return h_new, h_new
    _, hs = jax.lax.scan(step, h0, xs)
    return hs


if __name__ == "__main__":
    dim, hid, seq = 64, 32, 8

    key = jax.random.PRNGKey(0)
    kx, kh, ks, k1, k2, k3, k4 = jax.random.split(key, 7)

    # Deterministic init mimicking PyTorch's U(-1/sqrt(hid), 1/sqrt(hid)).
    bound = 1.0 / jnp.sqrt(jnp.float32(hid))
    w_ih = jax.random.uniform(k1, (hid, dim), jnp.float32, -bound, bound)
    w_hh = jax.random.uniform(k2, (hid, hid), jnp.float32, -bound, bound)
    b_ih = jax.random.uniform(k3, (hid,), jnp.float32, -bound, bound)
    b_hh = jax.random.uniform(k4, (hid,), jnp.float32, -bound, bound)

    x = jax.random.normal(kx, (dim,), jnp.float32)
    h = jax.random.normal(kh, (hid,), jnp.float32)
    xs = jax.random.normal(ks, (seq, dim), jnp.float32)

    params = jax.tree_util.tree_map(jax.block_until_ready,
                                    prepare_rnncell_params(w_ih, w_hh, b_ih, b_hh))

    # --- single cell step (the module's forward) ---
    out = rnn_cell_forward(x, h, params["w_cat"], params["bias"],
                           dim=dim, hid=hid)
    out = jax.block_until_ready(out)
    ref = reference_forward(x, h, w_ih, w_hh, b_ih, b_hh)
    assert out.shape == (hid,)
    assert jnp.allclose(out, ref, atol=1e-5, rtol=1e-5)

    # --- sequence-fused variant (launch + weight DMA amortized over T) ---
    hs = rnn_sequence_forward(xs, h, params["w_ih_t"], params["w_hh_t"],
                              params["bias"], dim=dim, hid=hid)
    hs = jax.block_until_ready(hs)
    hs_ref = reference_sequence(xs, h, w_ih, w_hh, b_ih, b_hh)
    assert hs.shape == (seq, hid)
    assert jnp.allclose(hs, hs_ref, atol=1e-4, rtol=1e-4)

    print("KERNEL_OK")
</pallas_src>

<mosaic_0001>
module attributes {stable_mosaic.version = 11 : i64} {
  func.func @_cell_kernel(%arg0: memref<1x128xf32, #tpu.memory_space<vmem>>, %arg1: memref<128x128xf32, #tpu.memory_space<vmem>>, %arg2: memref<1x128xf32, #tpu.memory_space<vmem>>, %arg3: memref<1x128xf32, #tpu.memory_space<vmem>>) attributes {dimension_semantics = [], scalar_prefetch = 0 : i64, scratch_operands = 0 : i64, tpu.core_type = #tpu.core_type<tc>} {
    %c0 = arith.constant 0 : index
    %c0_0 = arith.constant 0 : index
    %0 = vector.load %arg0[%c0, %c0_0] : memref<1x128xf32, #tpu.memory_space<vmem>>, vector<1x128xf32>
    %c0_1 = arith.constant 0 : index
    %c0_2 = arith.constant 0 : index
    %1 = vector.load %arg1[%c0_1, %c0_2] : memref<128x128xf32, #tpu.memory_space<vmem>>, vector<128x128xf32>
    %cst = arith.constant dense<0.000000e+00> : vector<1x128xf32>
    %2 = tpu.matmul %0, %1, %cst {dimension_numbers = #tpu.dot_dimension_numbers<[1], [0], [0], [1], [0, 0, 1, 1], [], []>} : vector<1x128xf32>, vector<128x128xf32>, vector<1x128xf32> -> vector<1x128xf32>
    %c0_3 = arith.constant 0 : index
    %c0_4 = arith.constant 0 : index
    %3 = vector.load %arg2[%c0_3, %c0_4] : memref<1x128xf32, #tpu.memory_space<vmem>>, vector<1x128xf32>
    %4 = arith.addf %2, %3 : vector<1x128xf32>
    %5 = math.tanh %4 : vector<1x128xf32>
    %c0_5 = arith.constant 0 : index
    %c0_6 = arith.constant 0 : index
    %6 = vector.load %arg3[%c0_5, %c0_6] : memref<1x128xf32, #tpu.memory_space<vmem>>, vector<1x128xf32>
    tpu.vector_store %arg3[%c0_5, %c0_6], %5 {strides = array<i32>} : memref<1x128xf32, #tpu.memory_space<vmem>>, vector<1x128xf32>,
    return
  }
}

</mosaic_0001>

<bundles_post_ra>
// kernel: rnn_cell_forward.1
= control target key start
LH: loop header
LB: loop body
LE: loop exit
PB: predicated region body
PF: predicated region fallthrough
CT: control target
= control target key end

     0   :  { %8 = vsyncpa [#allocation3], 0  ;;  %s231_s12 = smov [#allocation2]   ;;  %s278_s0 = inlined_call_operand.vmem [shape: f32[1,128], index: 0, kind: input, shape index: {}]   ;;  %s279_s1 = inlined_call_operand.hbm [shape: f32[128,128], index: 1, kind: input, shape index: {}]   ;;  %s280_s2 = inlined_call_operand.vmem [shape: f32[1,128], index: 2, kind: input, shape index: {}]   ;;  %s281_s3 = inlined_call_operand.vmem [shape: f32[1,128], index: 3, kind: output, shape index: {}]  }
   0x1   :  { %s16_s13 = sshll.u32 %s231_s12, 4  ;;  %s207_s16 = scalar_lea.hbm %s279_s1, 2048  ;;  %s17_s13 = int_to_ptr.vmem [resolvable:$true] %s16_s13 }
   0x2   :  { %p208_p0 = scmp.ne.s32.totalorder %s279_s1, %s207_s16  ;;  %p211_p1 = scmp.lt.u32.totalorder %s207_s16, %s279_s1 }
   0x4   :  { %p213_p2 = pnand %p211_p1, %p208_p0 }
   0x6   :  { %216 = shalt.err (!%p213_p2)
}
   0x7   :  { %s217_s21 = scalar_lea.vmem %s17_s13, 2048  ;;  %p222_p4 = scmp.lt.s32.totalorder %s17_s13, %s17_s13 }
   0x8   :  { %p218_p3 = scmp.ne.s32.totalorder %s17_s13, %s217_s21  ;;  %p223_p5 = scmp.lt.s32.totalorder %s217_s21, %s217_s21 }
   0xa   :  { %p224_p6 = por %p223_p5, %p222_p4 }
   0xc   :  { %p225_p7 = pnand %p224_p6, %p218_p3 }
   0xe   :  { %228 = shalt.err (!%p225_p7)
}
   0xf   :  { %s232_s22 = smov 128   ;;  %s233_s23 = smov 8  }
  0x10   :  { %22 = dma.hbm_to_vmem [thread:$0]  %s279_s1, 2048, %s17_s13, [#allocation3], %s232_s22, %s232_s22, %s233_s23  }
  0x11   :  { %229 = dma.done.wait [#allocation3], 2048  }
  0x12   :  { %230 = vsyncadd [#allocation3], 4294965248  ;;  %v234_v0 = vmov 0.0|0.0   ;;  %vm235_vm0 = vmmov 0   ;;  %v236_v1 = vmov 0.0   ;;  %v29_v2 = vld [vmem:[#allocation2] sm:$0xff] }
  0x13   :  { %175 = vmatprep.subr.bf16.mxu0 %v234_v0  ;;  %172 = vmatprep.mubr.msk.f32.mxu0 %vm235_vm0, %v236_v1  ;;  %v30_v3 = vld [vmem:[#allocation2 + $0x8] sm:$0xff]  ;;  %v31_v4 = vld [vmem:[#allocation2 + $0x10] sm:$0xff]  ;;  %v32_v6 = vld [vmem:[#allocation2 + $0x18] sm:$0xff] }
  0x14   :  { %v176_v5 = vpack.c.bf16 %v30_v3, %v29_v2  ;;  %v179_v7 = vpack.c.bf16 %v32_v6, %v31_v4  ;;  %v33_v8 = vld [vmem:[#allocation2 + $0x20] sm:$0xff]  ;;  %v34_v9 = vld [vmem:[#allocation2 + $0x28] sm:$0xff]  ;;  %v35_v11 = vld [vmem:[#allocation2 + $0x30] sm:$0xff] }
  0x15   :  { %v182_v10 = vpack.c.bf16 %v34_v9, %v33_v8  ;;  %v36_v12 = vld [vmem:[#allocation2 + $0x38] sm:$0xff]  ;;  %v37_v14 = vld [vmem:[#allocation2 + $0x40] sm:$0xff]  ;;  %v38_v15 = vld [vmem:[#allocation2 + $0x48] sm:$0xff] }
  0x16   :  { %177 = vmatpush3.bf16.msra.mxu0 %v176_v5  ;;  %v185_v13 = vpack.c.bf16 %v36_v12, %v35_v11  ;;  %v188_v16 = vpack.c.bf16 %v38_v15, %v37_v14  ;;  %v39_v17 = vld [vmem:[#allocation2 + $0x50] sm:$0xff]  ;;  %v40_v18 = vld [vmem:[#allocation2 + $0x58] sm:$0xff]  ;;  %v41_v20 = vld [vmem:[#allocation2 + $0x60] sm:$0xff] }
  0x17   :  { %178 = vmatprep.subr.bf16.mxu0 %v234_v0  ;;  %v191_v19 = vpack.c.bf16 %v40_v18, %v39_v17  ;;  %v42_v21 = vld [vmem:[#allocation2 + $0x68] sm:$0xff]  ;;  %v43_v23 = vld [vmem:[#allocation2 + $0x70] sm:$0xff]  ;;  %v44_v24 = vld [vmem:[#allocation2 + $0x78] sm:$0xff] }
  0x18   :  { %v194_v22 = vpack.c.bf16 %v42_v21, %v41_v20  ;;  %v197_v25 = vpack.c.bf16 %v44_v24, %v43_v23  ;;  %v28_v26 = vld [vmem:[%s278_s0] sm:$0x1] }
  0x19   :  { %v45_v27 = vld [vmem:[%s280_s2] sm:$0x1] }
  0x1a   :  { %180 = vmatpush3.bf16.msra.mxu0 %v179_v7 }
  0x1b   :  { %181 = vmatprep.subr.bf16.mxu0 %v234_v0 }
  0x1e   :  { %183 = vmatpush3.bf16.msra.mxu0 %v182_v10 }
  0x1f   :  { %184 = vmatprep.subr.bf16.mxu0 %v234_v0 }
  0x22   :  { %186 = vmatpush3.bf16.msra.mxu0 %v185_v13 }
  0x23   :  { %187 = vmatprep.subr.bf16.mxu0 %v234_v0 }
  0x26   :  { %189 = vmatpush3.bf16.msra.mxu0 %v188_v16 }
  0x27   :  { %190 = vmatprep.subr.bf16.mxu0 %v234_v0 }
  0x2a   :  { %192 = vmatpush3.bf16.msra.mxu0 %v191_v19 }
  0x2b   :  { %193 = vmatprep.subr.bf16.mxu0 %v234_v0 }
  0x2e   :  { %195 = vmatpush3.bf16.msra.mxu0 %v194_v22 }
  0x2f   :  { %196 = vmatprep.subr.bf16.mxu0 %v234_v0 }
  0x32   :  { %198 = vmatpush3.bf16.msra.mxu0 %v197_v25 }
  0x35   :  { %173 = vmatmul.mubr.f32.vlgmr.msra.gmra.mrb[0].mxu0 %v28_v26 }
 0x108   :  { %v112_v28 = vpop.f32.mrb[0].mxu0 }
 0x109   :  { %v113_v29 = vadd.f32 %v112_v28, %v45_v27  ;;  %v174_v30 = vpop.f32.mrb[1].mxu0 }
 0x10b   :  { %205 = vtanh.f32 %v113_v29 }
 0x115   :  { %v206_v31 = vpop.eup %205 }
 0x116   :  { %117 = vst [vmem:[%s281_s3] sm:$0x1] %v206_v31 }
 0x117   :  { %122 = vsyncpa [#allocation3], 1 }

</bundles_post_ra>
